<compile_context>
chip_gen: v5e
topology: v5e:2x2
jax: 0.10.0
libtpu: 0.0.40
codegen_flags: <defaults>
</compile_context>

<pallas_src>
import functools
import math

import jax
import jax.numpy as jnp
from jax.experimental import pallas as pl
from jax.experimental.pallas import tpu as pltpu


_LANE = 128
_SUBLANE = 16            # bf16 sublane packing (also satisfies the f32 requirement of 8)
_PAD_BIAS = -1e30        # padded-class bias: exp(pad - max) == 0 -> softmax unaffected
_CLAMP_FLOOR = float(jnp.finfo(jnp.float32).tiny)  # 1e-40 is subnormal -> flushed on TPU


def _round_up(v, m):
    return (v + m - 1) // m * m


def _sum_group_softmax(logits, group, c_pad):
    """logits: (tb, group*c_pad) f32.  Returns sum of per-model softmax probs (tb, c_pad)."""
    total = None
    for i in range(group):                       # static, lane-aligned slices
        lg = logits[:, i * c_pad:(i + 1) * c_pad]
        mx = jnp.max(lg, axis=-1, keepdims=True)
        e = jnp.exp(lg - mx)
        d = jnp.sum(e, axis=-1, keepdims=True)
        inv = pl.reciprocal(d, approx=True)      # EUP slot
        inv = inv * (2.0 - d * inv)              # one Newton step -> ~eps^2 error
        p = e * inv
        total = p if total is None else total + p
    return total


# ----------------------------------------------------------------------------- kernels
def _fused_kernel(x_ref, w_ref, b_ref, out_ref, acc_ref, *,
                  n_groups, group, c_pad, log_m, floor, unroll):
    """Weight slab resident in VMEM; N dimension chunked group-by-group in-kernel."""
    x = x_ref[...]                                # (tb, D) bf16

    def group_prob_sum(g):
        # w_ref[g]: (D, group*c_pad) bf16, b_ref[g]: (1, group*c_pad) f32
        logits = jnp.dot(x, w_ref[g], preferred_element_type=jnp.float32) + b_ref[g]
        return _sum_group_softmax(logits, group, c_pad)

    # first group: direct assign (no zeros pass over the accumulator)
    acc_ref[...] = group_prob_sum(0)

    if unroll:
        for g in range(1, n_groups):
            acc_ref[...] += group_prob_sum(g)
    else:
        @pl.loop(1, n_groups)
        def _(g):
            acc_ref[...] += group_prob_sum(g)

    # log(mean) == log(sum) - log(M); clamp at M*tiny so the mean-clamp semantics hold
    acc = jnp.maximum(acc_ref[...], floor)
    out_ref[...] = (jnp.log(acc) - log_m).astype(out_ref.dtype)


def _grouped_kernel(x_ref, w_ref, b_ref, out_ref, acc_ref, *,
                    group, c_pad, log_m, floor):
    """Fallback: model-group axis on the grid, weights streamed per step,
    resident VMEM accumulator across the group axis."""
    g = pl.program_id(1)
    n_g = pl.num_programs(1)

    logits = jnp.dot(x_ref[...], w_ref[...],
                     preferred_element_type=jnp.float32) + b_ref[...]
    probs = _sum_group_softmax(logits, group, c_pad)

    @pl.when(g == 0)
    def _():
        acc_ref[...] = probs

    @pl.when(g > 0)
    def _():
        acc_ref[...] += probs

    @pl.when(g == n_g - 1)
    def _():
        acc = jnp.maximum(acc_ref[...], floor)
        out_ref[...] = (jnp.log(acc) - log_m).astype(out_ref.dtype)


def _single_kernel(x_ref, w_ref, b_ref, out_ref):
    """M == 1: PyTorch returns model(x) directly (no softmax / log)."""
    out_ref[...] = (
        jnp.dot(x_ref[...], w_ref[...], preferred_element_type=jnp.float32)
        + b_ref[...]
    ).astype(out_ref.dtype)


# ----------------------------------------------------------------------------- wrapper
def ensemble_forward(x, weights, biases, *, tile_b=512, matmul_dtype=jnp.bfloat16,
                     force_per_model_grid=False, unroll_groups=4):
    """x: (B, D), weights: (M, D, C), biases: (M, C)  ->  (B, C) float32."""
    M, D, C = weights.shape
    B = x.shape[0]

    # ---- layout plumbing (lane-dense classes, sublane-aligned batch tiles) ----
    c_pad = _round_up(C, _LANE)
    b_tile = min(_round_up(tile_b, _SUBLANE), _round_up(B, _SUBLANE))
    n_b_tiles = pl.cdiv(B, b_tile)

    # No full-activation pad: only cast.  Partial tail batch blocks are handled by
    # Pallas (garbage rows are row-independent through the whole computation and the
    # corresponding output rows are masked at store).
    x_c = x.astype(matmul_dtype)
    w_p = jnp.zeros((M, D, c_pad), matmul_dtype).at[:, :, :C].set(
        weights.astype(matmul_dtype))
    b_p = jnp.full((M, c_pad), _PAD_BIAS, jnp.float32).at[:, :C].set(
        biases.astype(jnp.float32))
    itemsize = jnp.dtype(matmul_dtype).itemsize

    # ------------------------------------------------------------- single model
    if M == 1:
        out = pl.pallas_call(
            _single_kernel,
            out_shape=jax.ShapeDtypeStruct((B, c_pad), jnp.float32),
            grid_spec=pltpu.PrefetchScalarGridSpec(
                num_scalar_prefetch=0,
                grid=(n_b_tiles,),
                in_specs=[
                    pl.BlockSpec((b_tile, D), lambda i: (i, 0)),
                    pl.BlockSpec((D, c_pad), lambda i: (0, 0)),
                    pl.BlockSpec((1, c_pad), lambda i: (0, 0)),
                ],
                out_specs=pl.BlockSpec((b_tile, c_pad), lambda i: (i, 0)),
            ),
            compiler_params=pltpu.CompilerParams(dimension_semantics=("parallel",)),
        )(x_c, w_p[0], b_p[:1])
        return out[:, :C]

    # ------------------------------------------ group models along the lane axis
    # Present >=256 lanes to the MXU per matmul where possible (v6e/v7x 2x256 MXU)
    # while keeping the per-chunk f32 working set small.
    max_group = max(1, 512 // c_pad)
    group = 1
    for g in range(min(M, max_group), 0, -1):
        if M % g == 0:
            group = g
            break
    chunk = group * c_pad
    n_groups = M // group

    w_g = (w_p.reshape(n_groups, group, D, c_pad)
              .transpose(0, 2, 1, 3)
              .reshape(n_groups, D, chunk))
    b_g = b_p.reshape(n_groups, chunk)[:, None, :]           # (n_groups, 1, chunk)

    # ---------------------------------------------------- generation-aware VMEM gate
    try:
        vmem_cap = int(pltpu.get_tpu_info().vmem_capacity_bytes)   # per-core
    except Exception:
        vmem_cap = 64 << 20                                        # conservative (v7x)

    acc_bytes = b_tile * c_pad * 4
    interm_bytes = 3 * b_tile * chunk * 4                          # one chunk of f32 logits/exp
    io_bytes = 2 * (b_tile * D * itemsize + b_tile * c_pad * 4)    # double-buffered x / out tiles
    slab_bytes = n_groups * (D * chunk * itemsize + chunk * 4)     # single-buffered weights + bias

    fused_budget = io_bytes + slab_bytes + acc_bytes + interm_bytes
    use_fused = (not force_per_model_grid) and fused_budget <= int(0.6 * vmem_cap)

    if use_fused:
        budget = fused_budget
    else:
        budget = (io_bytes + 2 * (D * chunk * itemsize + chunk * 4)
                  + acc_bytes + interm_bytes)

    vmem_limit = None
    if budget > (12 << 20):
        vmem_limit = int(min(max(int(1.25 * budget), 32 << 20), int(0.9 * vmem_cap)))

    log_m = float(math.log(M))
    floor = float(M) * _CLAMP_FLOOR

    # ---------------------------------------------------------------- fused path
    if use_fused:
        kernel = functools.partial(
            _fused_kernel, n_groups=n_groups, group=group, c_pad=c_pad,
            log_m=log_m, floor=floor, unroll=(n_groups <= unroll_groups))

        def run_fused(single_buffer):
            if single_buffer:
                w_spec = pl.BlockSpec((n_groups, D, chunk), lambda i: (0, 0, 0),
                                      pipeline_mode=pl.Buffered(1))
                b_spec = pl.BlockSpec((n_groups, 1, chunk), lambda i: (0, 0, 0),
                                      pipeline_mode=pl.Buffered(1))
            else:
                w_spec = pl.BlockSpec((n_groups, D, chunk), lambda i: (0, 0, 0))
                b_spec = pl.BlockSpec((n_groups, 1, chunk), lambda i: (0, 0, 0))
            return pl.pallas_call(
                kernel,
                out_shape=jax.ShapeDtypeStruct((B, c_pad), jnp.float32),
                grid_spec=pltpu.PrefetchScalarGridSpec(
                    num_scalar_prefetch=0,
                    grid=(n_b_tiles,),
                    in_specs=[
                        pl.BlockSpec((b_tile, D), lambda i: (i, 0)),
                        w_spec,
                        b_spec,
                    ],
                    out_specs=pl.BlockSpec((b_tile, c_pad), lambda i: (i, 0)),
                    scratch_shapes=[pltpu.VMEM((b_tile, c_pad), jnp.float32)],
                ),
                compiler_params=pltpu.CompilerParams(
                    dimension_semantics=("parallel",),
                    vmem_limit_bytes=vmem_limit),
            )(x_c, w_g, b_g)

        try:
            out = run_fused(True)          # single-buffered constant weight slab
        except Exception:
            out = run_fused(False)         # safety net: plain double-buffered specs
        return out[:, :C]

    # -------------------------------------------- fallback: model-group grid axis
    kernel = functools.partial(_grouped_kernel, group=group, c_pad=c_pad,
                               log_m=log_m, floor=floor)
    out = pl.pallas_call(
        kernel,
        out_shape=jax.ShapeDtypeStruct((B, c_pad), jnp.float32),
        grid_spec=pltpu.PrefetchScalarGridSpec(
            num_scalar_prefetch=0,
            grid=(n_b_tiles, n_groups),
            in_specs=[
                pl.BlockSpec((b_tile, D), lambda i, g: (i, 0)),
                pl.BlockSpec((None, D, chunk), lambda i, g: (g, 0, 0)),
                pl.BlockSpec((None, 1, chunk), lambda i, g: (g, 0, 0)),
            ],
            out_specs=pl.BlockSpec((b_tile, c_pad), lambda i, g: (i, 0)),
            scratch_shapes=[pltpu.VMEM((b_tile, c_pad), jnp.float32)],
        ),
        compiler_params=pltpu.CompilerParams(
            dimension_semantics=("parallel", "arbitrary"),
            vmem_limit_bytes=vmem_limit),
    )(x_c, w_g, b_g)
    return out[:, :C]


# ----------------------------------------------------------------------------- reference
def reference_forward(x, weights, biases, matmul_dtype=jnp.float32):
    xc = x.astype(matmul_dtype)
    wc = weights.astype(matmul_dtype)
    logits = jnp.einsum("bd,mdc->mbc", xc, wc,
                        preferred_element_type=jnp.float32) + biases[:, None, :]
    probs = jax.nn.softmax(logits, axis=-1)
    avg = jnp.mean(probs, axis=0)
    avg = jnp.maximum(avg, jnp.finfo(jnp.float32).tiny)
    return jnp.log(avg)


if __name__ == "__main__":
    key = jax.random.PRNGKey(0)
    B, D, C, M = 8, 32, 100, 3   # C=100 exercises lane padding to 128

    kx, kw, kb = jax.random.split(key, 3)
    x = jax.random.normal(kx, (B, D), dtype=jnp.float32)
    weights = jax.random.normal(kw, (M, D, C), dtype=jnp.float32) * 0.1
    biases = jax.random.normal(kb, (M, C), dtype=jnp.float32) * 0.01

    # fused path (models grouped along lanes, resident single-buffered weight slab)
    out = jax.block_until_ready(ensemble_forward(x, weights, biases))
    assert out.shape == (B, C)
    ref_bf16 = reference_forward(x, weights, biases, matmul_dtype=jnp.bfloat16)
    ref_f32 = reference_forward(x, weights, biases, matmul_dtype=jnp.float32)
    assert jnp.allclose(out, ref_bf16, atol=1e-4, rtol=1e-4), (
        f"fused err {jnp.max(jnp.abs(out - ref_bf16))}")
    assert jnp.allclose(out, ref_f32, atol=3e-2, rtol=3e-2), (
        f"fused f32 err {jnp.max(jnp.abs(out - ref_f32))}")

    # fallback (model-group grid axis, streamed weights) path
    out_fb = jax.block_until_ready(
        ensemble_forward(x, weights, biases, force_per_model_grid=True))
    assert jnp.allclose(out_fb, ref_bf16, atol=1e-4, rtol=1e-4), (
        f"fallback err {jnp.max(jnp.abs(out_fb - ref_bf16))}")

    # group=1 + in-kernel pl.loop path, plus a partial tail batch tile (B=20, tile 16)
    M2, B2 = 5, 20
    kx2, kw2, kb2 = jax.random.split(jax.random.PRNGKey(1), 3)
    x2 = jax.random.normal(kx2, (B2, D), dtype=jnp.float32)
    w2 = jax.random.normal(kw2, (M2, D, C), dtype=jnp.float32) * 0.1
    b2 = jax.random.normal(kb2, (M2, C), dtype=jnp.float32) * 0.01
    out2 = jax.block_until_ready(
        ensemble_forward(x2, w2, b2, tile_b=16, unroll_groups=2))
    ref2 = reference_forward(x2, w2, b2, matmul_dtype=jnp.bfloat16)
    assert out2.shape == (B2, C)
    assert jnp.allclose(out2, ref2, atol=1e-4, rtol=1e-4), (
        f"loop-path err {jnp.max(jnp.abs(out2 - ref2))}")

    # single-model path: plain linear layer, no softmax / log
    out1 = jax.block_until_ready(ensemble_forward(x, weights[:1], biases[:1]))
    ref1 = jnp.dot(x.astype(jnp.bfloat16), weights[0].astype(jnp.bfloat16),
                   preferred_element_type=jnp.float32) + biases[0]
    assert out1.shape == (B, C)
    assert jnp.allclose(out1, ref1, atol=1e-4, rtol=1e-4), (
        f"single err {jnp.max(jnp.abs(out1 - ref1))}")

    print("KERNEL_OK")
</pallas_src>

<mosaic_0001>
module attributes {stable_mosaic.version = 11 : i64} {
  func.func @_fused_kernel(%arg0: i32, %arg1: memref<16x32xbf16, #tpu.memory_space<vmem>>, %arg2: memref<1x32x384xbf16, #tpu.memory_space<vmem>>, %arg3: memref<1x1x384xf32, #tpu.memory_space<vmem>>, %arg4: memref<16x128xf32, #tpu.memory_space<vmem>>, %arg5: memref<16x128xf32, #tpu.memory_space<vmem>>) attributes {dimension_semantics = [#tpu.dimension_semantics<parallel>], iteration_bounds = array<i64: 1>, scalar_prefetch = 0 : i64, scratch_operands = 1 : i64, tpu.core_type = #tpu.core_type<tc>, window_params = [{transform_indices = @transform_0, window_bounds = array<i64: 16, 32>}, {pipeline_mode = #tpu.pipeline_mode<synchronous>, transform_indices = @transform_1, window_bounds = array<i64: 1, 32, 384>}, {pipeline_mode = #tpu.pipeline_mode<synchronous>, transform_indices = @transform_2, window_bounds = array<i64: 1, 1, 384>}, {transform_indices = @transform_3, window_bounds = array<i64: 16, 128>}]} {
    %c0 = arith.constant 0 : index
    %c0_0 = arith.constant 0 : index
    %0 = vector.load %arg1[%c0, %c0_0] : memref<16x32xbf16, #tpu.memory_space<vmem>>, vector<16x32xbf16>
    %c0_1 = arith.constant 0 : index
    %c0_2 = arith.constant 0 : index
    %c0_3 = arith.constant 0 : index
    %1 = vector.load %arg2[%c0_1, %c0_2, %c0_3] : memref<1x32x384xbf16, #tpu.memory_space<vmem>>, vector<1x32x384xbf16>
    %2 = vector.shape_cast %1 : vector<1x32x384xbf16> to vector<32x384xbf16>
    %cst = arith.constant dense<0.000000e+00> : vector<16x384xf32>
    %3 = tpu.matmul %0, %2, %cst {dimension_numbers = #tpu.dot_dimension_numbers<[1], [0], [0], [1], [0, 0, 1, 1], [], []>} : vector<16x32xbf16>, vector<32x384xbf16>, vector<16x384xf32> -> vector<16x384xf32>
    %c0_4 = arith.constant 0 : index
    %c0_5 = arith.constant 0 : index
    %c0_6 = arith.constant 0 : index
    %4 = vector.load %arg3[%c0_4, %c0_5, %c0_6] : memref<1x1x384xf32, #tpu.memory_space<vmem>>, vector<1x1x384xf32>
    %5 = vector.shape_cast %4 : vector<1x1x384xf32> to vector<1x384xf32>
    %6 = vector.broadcast %5 : vector<1x384xf32> to vector<16x384xf32>
    %7 = arith.addf %3, %6 : vector<16x384xf32>
    %8 = vector.extract_strided_slice %7 {offsets = [0, 0], sizes = [16, 128], strides = [1, 1]} : vector<16x384xf32> to vector<16x128xf32>
    %cst_7 = arith.constant dense<0xFF800000> : vector<16xf32>
    %9 = vector.multi_reduction <maximumf>, %8, %cst_7 [1] : vector<16x128xf32> to vector<16xf32>
    %10 = vector.shape_cast %9 : vector<16xf32> to vector<16x1xf32>
    %11 = vector.broadcast %10 : vector<16x1xf32> to vector<16x128xf32>
    %12 = arith.subf %8, %11 : vector<16x128xf32>
    %13 = math.exp %12 : vector<16x128xf32>
    %cst_8 = arith.constant dense<0.000000e+00> : vector<16xf32>
    %14 = vector.multi_reduction <add>, %13, %cst_8 [1] : vector<16x128xf32> to vector<16xf32>
    %15 = vector.shape_cast %14 : vector<16xf32> to vector<16x1xf32>
    %16 = tpu.reciprocal %15 {approx = true} : vector<16x1xf32> -> vector<16x1xf32>
    %17 = arith.mulf %15, %16 : vector<16x1xf32>
    %cst_9 = arith.constant 2.000000e+00 : f32
    %18 = vector.broadcast %cst_9 : f32 to vector<16x1xf32>
    %19 = arith.subf %18, %17 : vector<16x1xf32>
    %20 = arith.mulf %16, %19 : vector<16x1xf32>
    %21 = vector.broadcast %20 : vector<16x1xf32> to vector<16x128xf32>
    %22 = arith.mulf %13, %21 : vector<16x128xf32>
    %23 = vector.extract_strided_slice %7 {offsets = [0, 128], sizes = [16, 128], strides = [1, 1]} : vector<16x384xf32> to vector<16x128xf32>
    %cst_10 = arith.constant dense<0xFF800000> : vector<16xf32>
    %24 = vector.multi_reduction <maximumf>, %23, %cst_10 [1] : vector<16x128xf32> to vector<16xf32>
    %25 = vector.shape_cast %24 : vector<16xf32> to vector<16x1xf32>
    %26 = vector.broadcast %25 : vector<16x1xf32> to vector<16x128xf32>
    %27 = arith.subf %23, %26 : vector<16x128xf32>
    %28 = math.exp %27 : vector<16x128xf32>
    %cst_11 = arith.constant dense<0.000000e+00> : vector<16xf32>
    %29 = vector.multi_reduction <add>, %28, %cst_11 [1] : vector<16x128xf32> to vector<16xf32>
    %30 = vector.shape_cast %29 : vector<16xf32> to vector<16x1xf32>
    %31 = tpu.reciprocal %30 {approx = true} : vector<16x1xf32> -> vector<16x1xf32>
    %32 = arith.mulf %30, %31 : vector<16x1xf32>
    %cst_12 = arith.constant 2.000000e+00 : f32
    %33 = vector.broadcast %cst_12 : f32 to vector<16x1xf32>
    %34 = arith.subf %33, %32 : vector<16x1xf32>
    %35 = arith.mulf %31, %34 : vector<16x1xf32>
    %36 = vector.broadcast %35 : vector<16x1xf32> to vector<16x128xf32>
    %37 = arith.mulf %28, %36 : vector<16x128xf32>
    %38 = arith.addf %22, %37 : vector<16x128xf32>
    %39 = vector.extract_strided_slice %7 {offsets = [0, 256], sizes = [16, 128], strides = [1, 1]} : vector<16x384xf32> to vector<16x128xf32>
    %cst_13 = arith.constant dense<0xFF800000> : vector<16xf32>
    %40 = vector.multi_reduction <maximumf>, %39, %cst_13 [1] : vector<16x128xf32> to vector<16xf32>
    %41 = vector.shape_cast %40 : vector<16xf32> to vector<16x1xf32>
    %42 = vector.broadcast %41 : vector<16x1xf32> to vector<16x128xf32>
    %43 = arith.subf %39, %42 : vector<16x128xf32>
    %44 = math.exp %43 : vector<16x128xf32>
    %cst_14 = arith.constant dense<0.000000e+00> : vector<16xf32>
    %45 = vector.multi_reduction <add>, %44, %cst_14 [1] : vector<16x128xf32> to vector<16xf32>
    %46 = vector.shape_cast %45 : vector<16xf32> to vector<16x1xf32>
    %47 = tpu.reciprocal %46 {approx = true} : vector<16x1xf32> -> vector<16x1xf32>
    %48 = arith.mulf %46, %47 : vector<16x1xf32>
    %cst_15 = arith.constant 2.000000e+00 : f32
    %49 = vector.broadcast %cst_15 : f32 to vector<16x1xf32>
    %50 = arith.subf %49, %48 : vector<16x1xf32>
    %51 = arith.mulf %47, %50 : vector<16x1xf32>
    %52 = vector.broadcast %51 : vector<16x1xf32> to vector<16x128xf32>
    %53 = arith.mulf %44, %52 : vector<16x128xf32>
    %54 = arith.addf %38, %53 : vector<16x128xf32>
    %c0_16 = arith.constant 0 : index
    %c0_17 = arith.constant 0 : index
    %55 = vector.load %arg5[%c0_16, %c0_17] : memref<16x128xf32, #tpu.memory_space<vmem>>, vector<16x128xf32>
    tpu.vector_store %arg5[%c0_16, %c0_17], %54 {strides = array<i32>} : memref<16x128xf32, #tpu.memory_space<vmem>>, vector<16x128xf32>,
    %c0_18 = arith.constant 0 : index
    %c0_19 = arith.constant 0 : index
    %56 = vector.load %arg5[%c0_18, %c0_19] : memref<16x128xf32, #tpu.memory_space<vmem>>, vector<16x128xf32>
    %cst_20 = arith.constant 3.52648305E-38 : f32
    %57 = vector.broadcast %cst_20 : f32 to vector<16x128xf32>
    %58 = arith.maximumf %56, %57 : vector<16x128xf32>
    %59 = math.log %58 : vector<16x128xf32>
    %cst_21 = arith.constant 1.09861231 : f32
    %60 = vector.broadcast %cst_21 : f32 to vector<16x128xf32>
    %61 = arith.subf %59, %60 : vector<16x128xf32>
    %c0_22 = arith.constant 0 : index
    %c0_23 = arith.constant 0 : index
    %62 = vector.load %arg4[%c0_22, %c0_23] : memref<16x128xf32, #tpu.memory_space<vmem>>, vector<16x128xf32>
    tpu.vector_store %arg4[%c0_22, %c0_23], %61 {strides = array<i32>} : memref<16x128xf32, #tpu.memory_space<vmem>>, vector<16x128xf32>,
    return
  }
  func.func @transform_0(%arg0: i32) -> (i32, i32) {
    %c0_i32 = arith.constant 0 : i32
    %c0_i32_0 = arith.constant 0 : i32
    return %arg0, %c0_i32 : i32, i32
  }
  func.func @transform_1(%arg0: i32) -> (i32, i32, i32) {
    %c0_i32 = arith.constant 0 : i32
    %c0_i32_0 = arith.constant 0 : i32
    %c0_i32_1 = arith.constant 0 : i32
    %c0_i32_2 = arith.constant 0 : i32
    return %c0_i32, %c0_i32_0, %c0_i32_1 : i32, i32, i32
  }
  func.func @transform_2(%arg0: i32) -> (i32, i32, i32) {
    %c0_i32 = arith.constant 0 : i32
    %c0_i32_0 = arith.constant 0 : i32
    %c0_i32_1 = arith.constant 0 : i32
    %c0_i32_2 = arith.constant 0 : i32
    return %c0_i32, %c0_i32_0, %c0_i32_1 : i32, i32, i32
  }
  func.func @transform_3(%arg0: i32) -> (i32, i32) {
    %c0_i32 = arith.constant 0 : i32
    %c0_i32_0 = arith.constant 0 : i32
    return %arg0, %c0_i32 : i32, i32
  }
}

module attributes {stable_mosaic.version = 11 : i64} {
  func.func @_fused_kernel(%arg0: i32, %arg1: memref<16x32xbf16, #tpu.memory_space<vmem>>, %arg2: memref<1x32x384xbf16, #tpu.memory_space<vmem>>, %arg3: memref<1x1x384xf32, #tpu.memory_space<vmem>>, %arg4: memref<16x128xf32, #tpu.memory_space<vmem>>, %arg5: memref<16x128xf32, #tpu.memory_space<vmem>>) attributes {dimension_semantics = [#tpu.dimension_semantics<parallel>], iteration_bounds = array<i64: 1>, scalar_prefetch = 0 : i64, scratch_operands = 1 : i64, tpu.core_type = #tpu.core_type<tc>, window_params = [{transform_indices = @transform_0, window_bounds = array<i64: 16, 32>}, {pipeline_mode = #tpu.pipeline_mode<synchronous>, transform_indices = @transform_1, window_bounds = array<i64: 1, 32, 384>}, {pipeline_mode = #tpu.pipeline_mode<synchronous>, transform_indices = @transform_2, window_bounds = array<i64: 1, 1, 384>}, {transform_indices = @transform_3, window_bounds = array<i64: 16, 128>}]} {
    %c0 = arith.constant 0 : index
    %c0_0 = arith.constant 0 : index
    %0 = vector.load %arg1[%c0, %c0_0] : memref<16x32xbf16, #tpu.memory_space<vmem>>, vector<16x32xbf16>
    %c0_1 = arith.constant 0 : index
    %c0_2 = arith.constant 0 : index
    %c0_3 = arith.constant 0 : index
    %1 = vector.load %arg2[%c0_1, %c0_2, %c0_3] : memref<1x32x384xbf16, #tpu.memory_space<vmem>>, vector<1x32x384xbf16>
    %2 = vector.shape_cast %1 : vector<1x32x384xbf16> to vector<32x384xbf16>
    %cst = arith.constant dense<0.000000e+00> : vector<16x384xf32>
    %3 = tpu.matmul %0, %2, %cst {dimension_numbers = #tpu.dot_dimension_numbers<[1], [0], [0], [1], [0, 0, 1, 1], [], []>} : vector<16x32xbf16>, vector<32x384xbf16>, vector<16x384xf32> -> vector<16x384xf32>
    %c0_4 = arith.constant 0 : index
    %c0_5 = arith.constant 0 : index
    %c0_6 = arith.constant 0 : index
    %4 = vector.load %arg3[%c0_4, %c0_5, %c0_6] : memref<1x1x384xf32, #tpu.memory_space<vmem>>, vector<1x1x384xf32>
    %5 = vector.shape_cast %4 : vector<1x1x384xf32> to vector<1x384xf32>
    %6 = vector.broadcast %5 : vector<1x384xf32> to vector<16x384xf32>
    %7 = arith.addf %3, %6 : vector<16x384xf32>
    %8 = vector.extract_strided_slice %7 {offsets = [0, 0], sizes = [16, 128], strides = [1, 1]} : vector<16x384xf32> to vector<16x128xf32>
    %cst_7 = arith.constant dense<0xFF800000> : vector<16xf32>
    %9 = vector.multi_reduction <maximumf>, %8, %cst_7 [1] : vector<16x128xf32> to vector<16xf32>
    %10 = vector.shape_cast %9 : vector<16xf32> to vector<16x1xf32>
    %11 = vector.broadcast %10 : vector<16x1xf32> to vector<16x128xf32>
    %12 = arith.subf %8, %11 : vector<16x128xf32>
    %13 = math.exp %12 : vector<16x128xf32>
    %cst_8 = arith.constant dense<0.000000e+00> : vector<16xf32>
    %14 = vector.multi_reduction <add>, %13, %cst_8 [1] : vector<16x128xf32> to vector<16xf32>
    %15 = vector.shape_cast %14 : vector<16xf32> to vector<16x1xf32>
    %16 = tpu.reciprocal %15 {approx = true} : vector<16x1xf32> -> vector<16x1xf32>
    %17 = arith.mulf %15, %16 : vector<16x1xf32>
    %cst_9 = arith.constant 2.000000e+00 : f32
    %18 = vector.broadcast %cst_9 : f32 to vector<16x1xf32>
    %19 = arith.subf %18, %17 : vector<16x1xf32>
    %20 = arith.mulf %16, %19 : vector<16x1xf32>
    %21 = vector.broadcast %20 : vector<16x1xf32> to vector<16x128xf32>
    %22 = arith.mulf %13, %21 : vector<16x128xf32>
    %23 = vector.extract_strided_slice %7 {offsets = [0, 128], sizes = [16, 128], strides = [1, 1]} : vector<16x384xf32> to vector<16x128xf32>
    %cst_10 = arith.constant dense<0xFF800000> : vector<16xf32>
    %24 = vector.multi_reduction <maximumf>, %23, %cst_10 [1] : vector<16x128xf32> to vector<16xf32>
    %25 = vector.shape_cast %24 : vector<16xf32> to vector<16x1xf32>
    %26 = vector.broadcast %25 : vector<16x1xf32> to vector<16x128xf32>
    %27 = arith.subf %23, %26 : vector<16x128xf32>
    %28 = math.exp %27 : vector<16x128xf32>
    %cst_11 = arith.constant dense<0.000000e+00> : vector<16xf32>
    %29 = vector.multi_reduction <add>, %28, %cst_11 [1] : vector<16x128xf32> to vector<16xf32>
    %30 = vector.shape_cast %29 : vector<16xf32> to vector<16x1xf32>
    %31 = tpu.reciprocal %30 {approx = true} : vector<16x1xf32> -> vector<16x1xf32>
    %32 = arith.mulf %30, %31 : vector<16x1xf32>
    %cst_12 = arith.constant 2.000000e+00 : f32
    %33 = vector.broadcast %cst_12 : f32 to vector<16x1xf32>
    %34 = arith.subf %33, %32 : vector<16x1xf32>
    %35 = arith.mulf %31, %34 : vector<16x1xf32>
    %36 = vector.broadcast %35 : vector<16x1xf32> to vector<16x128xf32>
    %37 = arith.mulf %28, %36 : vector<16x128xf32>
    %38 = arith.addf %22, %37 : vector<16x128xf32>
    %39 = vector.extract_strided_slice %7 {offsets = [0, 256], sizes = [16, 128], strides = [1, 1]} : vector<16x384xf32> to vector<16x128xf32>
    %cst_13 = arith.constant dense<0xFF800000> : vector<16xf32>
    %40 = vector.multi_reduction <maximumf>, %39, %cst_13 [1] : vector<16x128xf32> to vector<16xf32>
    %41 = vector.shape_cast %40 : vector<16xf32> to vector<16x1xf32>
    %42 = vector.broadcast %41 : vector<16x1xf32> to vector<16x128xf32>
    %43 = arith.subf %39, %42 : vector<16x128xf32>
    %44 = math.exp %43 : vector<16x128xf32>
    %cst_14 = arith.constant dense<0.000000e+00> : vector<16xf32>
    %45 = vector.multi_reduction <add>, %44, %cst_14 [1] : vector<16x128xf32> to vector<16xf32>
    %46 = vector.shape_cast %45 : vector<16xf32> to vector<16x1xf32>
    %47 = tpu.reciprocal %46 {approx = true} : vector<16x1xf32> -> vector<16x1xf32>
    %48 = arith.mulf %46, %47 : vector<16x1xf32>
    %cst_15 = arith.constant 2.000000e+00 : f32
    %49 = vector.broadcast %cst_15 : f32 to vector<16x1xf32>
    %50 = arith.subf %49, %48 : vector<16x1xf32>
    %51 = arith.mulf %47, %50 : vector<16x1xf32>
    %52 = vector.broadcast %51 : vector<16x1xf32> to vector<16x128xf32>
    %53 = arith.mulf %44, %52 : vector<16x128xf32>
    %54 = arith.addf %38, %53 : vector<16x128xf32>
    %c0_16 = arith.constant 0 : index
    %c0_17 = arith.constant 0 : index
    %55 = vector.load %arg5[%c0_16, %c0_17] : memref<16x128xf32, #tpu.memory_space<vmem>>, vector<16x128xf32>
    tpu.vector_store %arg5[%c0_16, %c0_17], %54 {strides = array<i32>} : memref<16x128xf32, #tpu.memory_space<vmem>>, vector<16x128xf32>,
    %c0_18 = arith.constant 0 : index
    %c0_19 = arith.constant 0 : index
    %56 = vector.load %arg5[%c0_18, %c0_19] : memref<16x128xf32, #tpu.memory_space<vmem>>, vector<16x128xf32>
    %cst_20 = arith.constant 3.52648305E-38 : f32
    %57 = vector.broadcast %cst_20 : f32 to vector<16x128xf32>
    %58 = arith.maximumf %56, %57 : vector<16x128xf32>
    %59 = math.log %58 : vector<16x128xf32>
    %cst_21 = arith.constant 1.09861231 : f32
    %60 = vector.broadcast %cst_21 : f32 to vector<16x128xf32>
    %61 = arith.subf %59, %60 : vector<16x128xf32>
    %c0_22 = arith.constant 0 : index
    %c0_23 = arith.constant 0 : index
    %62 = vector.load %arg4[%c0_22, %c0_23] : memref<16x128xf32, #tpu.memory_space<vmem>>, vector<16x128xf32>
    tpu.vector_store %arg4[%c0_22, %c0_23], %61 {strides = array<i32>} : memref<16x128xf32, #tpu.memory_space<vmem>>, vector<16x128xf32>,
    return
  }
  func.func @transform_0(%arg0: i32) -> (i32, i32) {
    %c0_i32 = arith.constant 0 : i32
    %c0_i32_0 = arith.constant 0 : i32
    return %arg0, %c0_i32 : i32, i32
  }
  func.func @transform_1(%arg0: i32) -> (i32, i32, i32) {
    %c0_i32 = arith.constant 0 : i32
    %c0_i32_0 = arith.constant 0 : i32
    %c0_i32_1 = arith.constant 0 : i32
    %c0_i32_2 = arith.constant 0 : i32
    return %c0_i32, %c0_i32_0, %c0_i32_1 : i32, i32, i32
  }
  func.func @transform_2(%arg0: i32) -> (i32, i32, i32) {
    %c0_i32 = arith.constant 0 : i32
    %c0_i32_0 = arith.constant 0 : i32
    %c0_i32_1 = arith.constant 0 : i32
    %c0_i32_2 = arith.constant 0 : i32
    return %c0_i32, %c0_i32_0, %c0_i32_1 : i32, i32, i32
  }
  func.func @transform_3(%arg0: i32) -> (i32, i32) {
    %c0_i32 = arith.constant 0 : i32
    %c0_i32_0 = arith.constant 0 : i32
    return %arg0, %c0_i32 : i32, i32
  }
}

</mosaic_0001>

<bundles_post_ra>
// kernel: tpu_custom_call.1
= control target key start
LH: loop header
LB: loop body
LE: loop exit
PB: predicated region body
PF: predicated region fallthrough
CT: control target
= control target key end

     0   :  { %8 = vsyncpa [#allocation4], 0  ;;  %s494_s0 = inlined_call_operand.hbm [shape: bf16[8,32], index: 0, kind: input, shape index: {}]   ;;  %s495_s1 = inlined_call_operand.hbm [shape: bf16[1,32,384], index: 1, kind: input, shape index: {}]   ;;  %s496_s2 = inlined_call_operand.hbm [shape: f32[1,1,384], index: 2, kind: input, shape index: {}]   ;;  %s497_s3 = inlined_call_operand.hbm [shape: f32[8,128], index: 3, kind: output, shape index: {}]  }
   0x1   :  { %9 = vsyncpa [#allocation7], 0 }
   0x2   :  { %10 = vsyncpa [#allocation5], 0  ;;  %s28_s14 = sshll.u32 %s495_s1, 4  ;;  %s29_s14 = int_to_ptr.hbm [resolvable:$true] %s28_s14 }
   0x3   :  { %14 = vsyncadd [#allocation4], 64  ;;  %s452_s15 = smov [#allocation6]   ;;  %s15_s19 = sshll.u32 %s494_s0, 4  ;;  %s16_s19 = int_to_ptr.hbm [resolvable:$true] %s15_s19 }
   0x4   :  { %s30_s16 = sshll.u32 %s452_s15, 4  ;;  %s453_s20 = smov 192   ;;  %s31_s16 = int_to_ptr.vmem [resolvable:$true] %s30_s16 }
   0x5   :  { %s454_s21 = smov 12   ;;  %s455_s22 = smov [#allocation3]  }
   0x6   :  { %36 = dma.hbm_to_vmem [thread:$0]  %s29_s14, 768, %s31_s16, [#allocation7], %s453_s20, %s453_s20, %s454_s21  }
   0x7   :  { %s17_s23 = sshll.u32 %s455_s22, 4  ;;  %s456_s24 = smov 64   ;;  %s18_s23 = int_to_ptr.vmem [resolvable:$true] %s17_s23 }
   0x8   :  { %s457_s25 = smov 4   ;;  %s42_s27 = sshll.u32 %s496_s2, 4  ;;  %s43_s27 = int_to_ptr.hbm [resolvable:$true] %s42_s27 }
   0x9   :  { %23 = dma.hbm_to_vmem [thread:$0]  %s16_s19, 64, %s18_s23, [#allocation4], %s456_s24, %s456_s24, %s457_s25  }
   0xa   :  { %s458_s28 = smov [#allocation8]  }
   0xb   :  { %s44_s29 = sshll.u32 %s458_s28, 4  ;;  %s45_s29 = int_to_ptr.vmem [resolvable:$true] %s44_s29 }
   0xc   :  { %47 = dma.hbm_to_vmem [thread:$0]  %s43_s27, 48, %s45_s29, [#allocation7]  }
   0xd   :  { %446 = dma.done.wait [#allocation4], 128  }
   0xe   :  { %447 = vsyncadd [#allocation4], 4294967168 }
   0xf   :  { %448 = dma.done.wait [#allocation7], 816  }
  0x10   :  { %449 = vsyncadd [#allocation7], 4294966480  ;;  %v290_v0 = vld [vmem:[#allocation6 + $0x18] sm:$0xf]  ;;  %v310_v1 = vld [vmem:[#allocation6 + $0x20] sm:$0xf0] }
  0x11   :  { %v309_v2 = vld [vmem:[#allocation6 + $0x1c] sm:$0xf]  ;;  %v291_v3 = vor.u32 %v310_v1, %v290_v0  ;;  %v292_v4 = vld [vmem:[#allocation6 + $0x24] sm:$0xf0]  ;;  %v298_v5 = vld [vmem:[#allocation6 + $0x20] sm:$0xf] }
  0x12   :  { %v311_v6 = vld [vmem:[#allocation6 + $0x28] sm:$0xf0]  ;;  %v295_v7 = vor.u32 %v309_v2, %v292_v4  ;;  %v278_v9 = vld [vmem:[#allocation6] sm:$0xf]  ;;  %v306_v11 = vld [vmem:[#allocation6 + $0x4] sm:$0xf] }
  0x13   :  { %v299_v8 = vor.u32 %v311_v6, %v298_v5  ;;  %v307_v10 = vld [vmem:[#allocation6 + $0x8] sm:$0xf0]  ;;  %126 = vmatpush.bf16.msra.mxu0 %v291_v3  ;;  %v280_v13 = vld [vmem:[#allocation6 + $0xc] sm:$0xf0]  ;;  %v286_v14 = vld [vmem:[#allocation6 + $0x8] sm:$0xf] }
  0x14   :  { %v279_v12 = vor.u32 %v307_v10, %v278_v9  ;;  %v308_v15 = vld [vmem:[#allocation6 + $0x10] sm:$0xf0]  ;;  %140 = vmatpush.bf16.msra.mxu1 %v295_v7  ;;  %v283_v16 = vor.u32 %v306_v11, %v280_v13  ;;  %v305_v18 = vld [vmem:[#allocation3] sm:$0xff]  ;;  %vm116_vm0 = vcmask 261120   ;;  %v71_v19 = vld [vmem:[#allocation8] sm:$0x7] }
  0x15   :  { %154 = vmatpush.bf16.msra.mxu2 %v299_v8  ;;  %v287_v17 = vor.u32 %v308_v15, %v286_v14  ;;  %v73_v20 = vperm.slane %v71_v19, 0  ;;  %v74_v21 = vperm.slane %v71_v19, 1  ;;  %v75_v26 = vperm.slane %v71_v19, 2 }
  0x17   :  { %127 = vmatpush.bf16.msra.mxu0 %v279_v12 }
  0x18   :  { %141 = vmatpush.bf16.msra.mxu1 %v283_v16 }
  0x19   :  { %155 = vmatpush.bf16.msra.mxu2 %v287_v17 }
  0x1a   :  { %300 = vmatmul.msk.bf16.vlgmr.msra.gmra.mxu0 %vm116_vm0, %v305_v18 }
  0x1b   :  { %301 = vmatmul.msk.bf16.vlgmr.msra.gmra.mxu1 %vm116_vm0, %v305_v18 }
  0x1c   :  { %302 = vmatmul.msk.bf16.vlgmr.msra.gmra.mxu2 %vm116_vm0, %v305_v18 }
  0x97   :  { %v129_v22 = vpop.f32.mrf.mxu0 }
  0x98   :  { %v130_v23 = vadd.f32 %v129_v22, %v73_v20  ;;  %v143_v24 = vpop.f32.mrf.mxu1 }
  0x99   :  { %v144_v25 = vadd.f32 %v143_v24, %v74_v21 }
  0x9a   :  { %162 = vmax.xlane.f32.xlu0 %v130_v23 }
  0x9b   :  { %186 = vmax.xlane.f32.xlu1 %v144_v25 }
  0x9f   :  { %v157_v27 = vpop.f32.mrf.mxu2  ;;  %v131_v29 = vpop.f32.mrf.mxu0 }
  0xa0   :  { %v158_v28 = vadd.f32 %v157_v27, %v75_v26  ;;  %v132_v30 = vadd.f32 %v131_v29, %v73_v20  ;;  %v145_v31 = vpop.f32.mrf.mxu1 }
  0xa1   :  { %v146_v32 = vadd.f32 %v145_v31, %v74_v21 }
  0xa2   :  { %212 = vmax.xlane.f32.xlu2 %v158_v28  ;;  %164 = vmax.xlane.f32.xlu0 %v132_v30 }
  0xa3   :  { %188 = vmax.xlane.f32.xlu1 %v146_v32 }
  0xa7   :  { %v159_v33 = vpop.f32.mrf.mxu2 }
  0xa8   :  { %v160_v34 = vadd.f32 %v159_v33, %v75_v26 }
  0xaa   :  { %214 = vmax.xlane.f32.xlu2 %v160_v34 }
 0x10d   :  { %v163_v35 = vpop.xlane.xlu0 %162 }
 0x10e   :  { %v187_v36 = vpop.xlane.xlu1 %186  ;;  %v166_v37 = vsub.f32 %v130_v23, %v163_v35 }
 0x10f   :  { %v190_v38 = vsub.f32 %v144_v25, %v187_v36 }
 0x110   :  { %v168_v39 = vmul.f32 1.442695, %v166_v37 }
 0x111   :  { %v192_v40 = vmul.f32 1.442695, %v190_v38 }
 0x112   :  { %322 = vpow2.f32 %v168_v39 }
 0x113   :  { %324 = vpow2.f32 %v192_v40 }
 0x115   :  { %v213_v41 = vpop.xlane.xlu2 %212  ;;  %v165_v42 = vpop.xlane.xlu0 %164 }
 0x116   :  { %v189_v43 = vpop.xlane.xlu1 %188  ;;  %v167_v44 = vsub.f32 %v132_v30, %v165_v42  ;;  %v216_v50 = vsub.f32 %v158_v28, %v213_v41 }
 0x117   :  { %v191_v45 = vsub.f32 %v146_v32, %v189_v43 }
 0x118   :  { %v323_v46 = vpop.eup %322  ;;  %v170_v47 = vmul.f32 1.442695, %v167_v44  ;;  %v218_v53 = vmul.f32 1.442695, %v216_v50 }
 0x119   :  { %v325_v48 = vpop.eup %324  ;;  %v194_v49 = vmul.f32 1.442695, %v191_v45  ;;  %172 = vadd.xlane.f32.xlu0 %v323_v46 }
 0x11a   :  { %326 = vpow2.f32 %v170_v47  ;;  %196 = vadd.xlane.f32.xlu2 %v325_v48 }
 0x11b   :  { %328 = vpow2.f32 %v194_v49 }
 0x11d   :  { %v215_v51 = vpop.xlane.xlu2 %214 }
 0x11e   :  { %v217_v52 = vsub.f32 %v160_v34, %v215_v51 }
 0x120   :  { %v220_v54 = vmul.f32 1.442695, %v217_v52  ;;  %v327_v55 = vpop.eup %326 }
 0x121   :  { %v329_v56 = vpop.eup %328  ;;  %174 = vadd.xlane.f32.xlu1 %v327_v55 }
 0x122   :  { %330 = vpow2.f32 %v220_v54  ;;  %198 = vadd.xlane.f32.xlu0 %v329_v56 }
 0x123   :  { %332 = vpow2.f32 %v218_v53 }
 0x128   :  { %v331_v57 = vpop.eup %330 }
 0x129   :  { %v333_v58 = vpop.eup %332  ;;  %224 = vadd.xlane.f32.xlu2 %v331_v57 }
 0x12a   :  { %222 = vadd.xlane.f32.xlu1 %v333_v58 }
 0x18c   :  { %v173_v59 = vpop.xlane.xlu0 %172 }
 0x18d   :  { %v197_v60 = vpop.xlane.xlu2 %196  ;;  %334 = vrcp.f32 %v173_v59 }
 0x18e   :  { %336 = vrcp.f32 %v197_v60 }
 0x193   :  { %v335_v63 = vpop.eup %334 }
 0x194   :  { %v175_v61 = vpop.xlane.xlu1 %174  ;;  %v337_v0 = vpop.eup %336  ;;  %v178_v2 = vmul.f32 %v335_v63, %v173_v59 }
 0x195   :  { %338 = vrcp.f32 %v175_v61  ;;  %v199_v62 = vpop.xlane.xlu0 %198  ;;  %v202_v1 = vmul.f32 %v337_v0, %v197_v60 }
 0x196   :  { %340 = vrcp.f32 %v199_v62  ;;  %v180_v10 = vsub.f32 2.0, %v178_v2 }
 0x197   :  { %v204_v9 = vsub.f32 2.0, %v202_v1 }
 0x198   :  { %v182_v17 = vmul.f32 %v335_v63, %v180_v10 }
 0x199   :  { %v206_v16 = vmul.f32 %v337_v0, %v204_v9 }
 0x19a   :  { %v184_v25 = vmul.f32 %v323_v46, %v182_v17 }
 0x19b   :  { %v339_v3 = vpop.eup %338  ;;  %v208_v24 = vmul.f32 %v325_v48, %v206_v16 }
 0x19c   :  { %v225_v4 = vpop.xlane.xlu2 %224  ;;  %v341_v5 = vpop.eup %340  ;;  %v179_v6 = vmul.f32 %v339_v3, %v175_v61 }
 0x19d   :  { %342 = vrcp.f32 %v225_v4  ;;  %v223_v7 = vpop.xlane.xlu1 %222  ;;  %v203_v8 = vmul.f32 %v341_v5, %v199_v62  ;;  %v210_v31 = vadd.f32 %v208_v24, %v184_v25 }
 0x19e   :  { %344 = vrcp.f32 %v223_v7  ;;  %v181_v11 = vsub.f32 2.0, %v179_v6 }
 0x19f   :  { %v205_v12 = vsub.f32 2.0, %v203_v8 }
 0x1a0   :  { %v183_v13 = vmul.f32 %v339_v3, %v181_v11 }
 0x1a1   :  { %v207_v14 = vmul.f32 %v341_v5, %v205_v12 }
 0x1a2   :  { %v185_v21 = vmul.f32 %v327_v55, %v183_v13 }
 0x1a3   :  { %v343_v15 = vpop.eup %342  ;;  %v209_v22 = vmul.f32 %v329_v56, %v207_v14 }
 0x1a4   :  { %v345_v18 = vpop.eup %344  ;;  %v229_v19 = vmul.f32 %v343_v15, %v225_v4 }
 0x1a5   :  { %v228_v20 = vmul.f32 %v345_v18, %v223_v7  ;;  %v211_v29 = vadd.f32 %v209_v22, %v185_v21 }
 0x1a6   :  { %v231_v23 = vsub.f32 2.0, %v229_v19 }
 0x1a7   :  { %v230_v26 = vsub.f32 2.0, %v228_v20 }
 0x1a8   :  { %v233_v27 = vmul.f32 %v343_v15, %v231_v23 }
 0x1a9   :  { %v232_v28 = vmul.f32 %v345_v18, %v230_v26 }
 0x1aa   :  { %v235_v30 = vmul.f32 %v331_v57, %v233_v27 }
 0x1ab   :  { %v234_v32 = vmul.f32 %v333_v58, %v232_v28 }
 0x1ac   :  { %v237_v33 = vadd.f32 %v235_v30, %v211_v29 }
 0x1ad   :  { %v236_v34 = vadd.f32 %v234_v32, %v210_v31 }
 0x1ae   :  { %v243_v35 = vmax.f32 %v237_v33, 3.526483e-38 }
 0x1af   :  { %v242_v36 = vmax.f32 %v236_v34, 3.526483e-38 }
 0x1b0   :  { %346 = vlog2.f32 %v243_v35 }
 0x1b1   :  { %348 = vlog2.f32 %v242_v36 }
 0x1b6   :  { %v347_v37 = vpop.eup %346 }
 0x1b7   :  { %v349_v38 = vpop.eup %348  ;;  %v247_v39 = vmul.f32 0.6931472, %v347_v37 }
 0x1b8   :  { %v245_v40 = vmul.f32 0.6931472, %v349_v38 }
 0x1b9   :  { %v304_v41 = vadd.f32 -1.0986123, %v247_v39 }
 0x1ba   :  { %v303_v42 = vadd.f32 -1.0986123, %v245_v40 }
 0x1bb   :  { %251 = vst [vmem:[#allocation9 + $0x8] sm:$0xff] %v304_v41 }
 0x1bc   :  { %250 = vst [vmem:[#allocation9] sm:$0xff] %v303_v42 }
 0x1bd   :  { %255 = vsyncadd [#allocation5], 128  ;;  %s258_s30 = sshll.u32 %s497_s3, 4  ;;  %s459_s4 = smov [#allocation9]   ;;  %s259_s30 = int_to_ptr.hbm [resolvable:$true] %s258_s30 }
 0x1be   :  { %s256_s5 = sshll.u32 %s459_s4, 4  ;;  %s460_s6 = smov 128   ;;  %s257_s5 = int_to_ptr.vmem [resolvable:$true] %s256_s5 }
 0x1bf   :  { %s461_s7 = smov 8  }
 0x1c0   :  { %264 = dma.vmem_to_hbm [thread:$0]  %s257_s5, 128, %s259_s30, [#allocation5], %s460_s6, %s460_s6, %s461_s7  }
 0x1c1   :  { %450 = dma.done.wait [#allocation5], 256  }
 0x1c2   :  { %451 = vsyncadd [#allocation5], 4294967040 }
 0x1c3   :  { %269 = vsyncpa [#allocation4], 1 }
 0x1c4   :  { %270 = vsyncpa [#allocation7], 1 }
 0x1c5   :  { %271 = vsyncpa [#allocation5], 1 }

// kernel: tpu_custom_call.1
= control target key start
LH: loop header
LB: loop body
LE: loop exit
PB: predicated region body
PF: predicated region fallthrough
CT: control target
= control target key end

     0   :  { %8 = vsyncpa [#allocation4], 0  ;;  %s494_s0 = inlined_call_operand.hbm [shape: bf16[8,32], index: 0, kind: input, shape index: {}]   ;;  %s495_s1 = inlined_call_operand.hbm [shape: bf16[1,32,384], index: 1, kind: input, shape index: {}]   ;;  %s496_s2 = inlined_call_operand.hbm [shape: f32[1,1,384], index: 2, kind: input, shape index: {}]   ;;  %s497_s3 = inlined_call_operand.hbm [shape: f32[8,128], index: 3, kind: output, shape index: {}]  }
   0x1   :  { %9 = vsyncpa [#allocation7], 0 }
   0x2   :  { %10 = vsyncpa [#allocation5], 0  ;;  %s28_s14 = sshll.u32 %s495_s1, 4  ;;  %s29_s14 = int_to_ptr.hbm [resolvable:$true] %s28_s14 }
   0x3   :  { %14 = vsyncadd [#allocation4], 64  ;;  %s452_s15 = smov [#allocation6]   ;;  %s15_s19 = sshll.u32 %s494_s0, 4  ;;  %s16_s19 = int_to_ptr.hbm [resolvable:$true] %s15_s19 }
   0x4   :  { %s30_s16 = sshll.u32 %s452_s15, 4  ;;  %s453_s20 = smov 192   ;;  %s31_s16 = int_to_ptr.vmem [resolvable:$true] %s30_s16 }
   0x5   :  { %s454_s21 = smov 12   ;;  %s455_s22 = smov [#allocation3]  }
   0x6   :  { %36 = dma.hbm_to_vmem [thread:$0]  %s29_s14, 768, %s31_s16, [#allocation7], %s453_s20, %s453_s20, %s454_s21  }
   0x7   :  { %s17_s23 = sshll.u32 %s455_s22, 4  ;;  %s456_s24 = smov 64   ;;  %s18_s23 = int_to_ptr.vmem [resolvable:$true] %s17_s23 }
   0x8   :  { %s457_s25 = smov 4   ;;  %s42_s27 = sshll.u32 %s496_s2, 4  ;;  %s43_s27 = int_to_ptr.hbm [resolvable:$true] %s42_s27 }
   0x9   :  { %23 = dma.hbm_to_vmem [thread:$0]  %s16_s19, 64, %s18_s23, [#allocation4], %s456_s24, %s456_s24, %s457_s25  }
   0xa   :  { %s458_s28 = smov [#allocation8]  }
   0xb   :  { %s44_s29 = sshll.u32 %s458_s28, 4  ;;  %s45_s29 = int_to_ptr.vmem [resolvable:$true] %s44_s29 }
   0xc   :  { %47 = dma.hbm_to_vmem [thread:$0]  %s43_s27, 48, %s45_s29, [#allocation7]  }
   0xd   :  { %446 = dma.done.wait [#allocation4], 128  }
   0xe   :  { %447 = vsyncadd [#allocation4], 4294967168 }
   0xf   :  { %448 = dma.done.wait [#allocation7], 816  }
  0x10   :  { %449 = vsyncadd [#allocation7], 4294966480  ;;  %v290_v0 = vld [vmem:[#allocation6 + $0x18] sm:$0xf]  ;;  %v310_v1 = vld [vmem:[#allocation6 + $0x20] sm:$0xf0] }
  0x11   :  { %v309_v2 = vld [vmem:[#allocation6 + $0x1c] sm:$0xf]  ;;  %v291_v3 = vor.u32 %v310_v1, %v290_v0  ;;  %v292_v4 = vld [vmem:[#allocation6 + $0x24] sm:$0xf0]  ;;  %v298_v5 = vld [vmem:[#allocation6 + $0x20] sm:$0xf] }
  0x12   :  { %v311_v6 = vld [vmem:[#allocation6 + $0x28] sm:$0xf0]  ;;  %v295_v7 = vor.u32 %v309_v2, %v292_v4  ;;  %v278_v9 = vld [vmem:[#allocation6] sm:$0xf]  ;;  %v306_v11 = vld [vmem:[#allocation6 + $0x4] sm:$0xf] }
  0x13   :  { %v299_v8 = vor.u32 %v311_v6, %v298_v5  ;;  %v307_v10 = vld [vmem:[#allocation6 + $0x8] sm:$0xf0]  ;;  %126 = vmatpush.bf16.msra.mxu0 %v291_v3  ;;  %v280_v13 = vld [vmem:[#allocation6 + $0xc] sm:$0xf0]  ;;  %v286_v14 = vld [vmem:[#allocation6 + $0x8] sm:$0xf] }
  0x14   :  { %v279_v12 = vor.u32 %v307_v10, %v278_v9  ;;  %v308_v15 = vld [vmem:[#allocation6 + $0x10] sm:$0xf0]  ;;  %140 = vmatpush.bf16.msra.mxu1 %v295_v7  ;;  %v283_v16 = vor.u32 %v306_v11, %v280_v13  ;;  %v305_v18 = vld [vmem:[#allocation3] sm:$0xff]  ;;  %vm116_vm0 = vcmask 261120   ;;  %v71_v19 = vld [vmem:[#allocation8] sm:$0x7] }
  0x15   :  { %154 = vmatpush.bf16.msra.mxu2 %v299_v8  ;;  %v287_v17 = vor.u32 %v308_v15, %v286_v14  ;;  %v73_v20 = vperm.slane %v71_v19, 0  ;;  %v74_v21 = vperm.slane %v71_v19, 1  ;;  %v75_v26 = vperm.slane %v71_v19, 2 }
  0x17   :  { %127 = vmatpush.bf16.msra.mxu0 %v279_v12 }
  0x18   :  { %141 = vmatpush.bf16.msra.mxu1 %v283_v16 }
  0x19   :  { %155 = vmatpush.bf16.msra.mxu2 %v287_v17 }
  0x1a   :  { %300 = vmatmul.msk.bf16.vlgmr.msra.gmra.mxu0 %vm116_vm0, %v305_v18 }
  0x1b   :  { %301 = vmatmul.msk.bf16.vlgmr.msra.gmra.mxu1 %vm116_vm0, %v305_v18 }
  0x1c   :  { %302 = vmatmul.msk.bf16.vlgmr.msra.gmra.mxu2 %vm116_vm0, %v305_v18 }
  0x97   :  { %v129_v22 = vpop.f32.mrf.mxu0 }
  0x98   :  { %v130_v23 = vadd.f32 %v129_v22, %v73_v20  ;;  %v143_v24 = vpop.f32.mrf.mxu1 }
  0x99   :  { %v144_v25 = vadd.f32 %v143_v24, %v74_v21 }
  0x9a   :  { %162 = vmax.xlane.f32.xlu0 %v130_v23 }
  0x9b   :  { %186 = vmax.xlane.f32.xlu1 %v144_v25 }
  0x9f   :  { %v157_v27 = vpop.f32.mrf.mxu2  ;;  %v131_v29 = vpop.f32.mrf.mxu0 }
  0xa0   :  { %v158_v28 = vadd.f32 %v157_v27, %v75_v26  ;;  %v132_v30 = vadd.f32 %v131_v29, %v73_v20  ;;  %v145_v31 = vpop.f32.mrf.mxu1 }
  0xa1   :  { %v146_v32 = vadd.f32 %v145_v31, %v74_v21 }
  0xa2   :  { %212 = vmax.xlane.f32.xlu2 %v158_v28  ;;  %164 = vmax.xlane.f32.xlu0 %v132_v30 }
  0xa3   :  { %188 = vmax.xlane.f32.xlu1 %v146_v32 }
  0xa7   :  { %v159_v33 = vpop.f32.mrf.mxu2 }
  0xa8   :  { %v160_v34 = vadd.f32 %v159_v33, %v75_v26 }
  0xaa   :  { %214 = vmax.xlane.f32.xlu2 %v160_v34 }
 0x10d   :  { %v163_v35 = vpop.xlane.xlu0 %162 }
 0x10e   :  { %v187_v36 = vpop.xlane.xlu1 %186  ;;  %v166_v37 = vsub.f32 %v130_v23, %v163_v35 }
 0x10f   :  { %v190_v38 = vsub.f32 %v144_v25, %v187_v36 }
 0x110   :  { %v168_v39 = vmul.f32 1.442695, %v166_v37 }
 0x111   :  { %v192_v40 = vmul.f32 1.442695, %v190_v38 }
 0x112   :  { %322 = vpow2.f32 %v168_v39 }
 0x113   :  { %324 = vpow2.f32 %v192_v40 }
 0x115   :  { %v213_v41 = vpop.xlane.xlu2 %212  ;;  %v165_v42 = vpop.xlane.xlu0 %164 }
 0x116   :  { %v189_v43 = vpop.xlane.xlu1 %188  ;;  %v167_v44 = vsub.f32 %v132_v30, %v165_v42  ;;  %v216_v50 = vsub.f32 %v158_v28, %v213_v41 }
 0x117   :  { %v191_v45 = vsub.f32 %v146_v32, %v189_v43 }
 0x118   :  { %v323_v46 = vpop.eup %322  ;;  %v170_v47 = vmul.f32 1.442695, %v167_v44  ;;  %v218_v53 = vmul.f32 1.442695, %v216_v50 }
 0x119   :  { %v325_v48 = vpop.eup %324  ;;  %v194_v49 = vmul.f32 1.442695, %v191_v45  ;;  %172 = vadd.xlane.f32.xlu0 %v323_v46 }
 0x11a   :  { %326 = vpow2.f32 %v170_v47  ;;  %196 = vadd.xlane.f32.xlu2 %v325_v48 }
 0x11b   :  { %328 = vpow2.f32 %v194_v49 }
 0x11d   :  { %v215_v51 = vpop.xlane.xlu2 %214 }
 0x11e   :  { %v217_v52 = vsub.f32 %v160_v34, %v215_v51 }
 0x120   :  { %v220_v54 = vmul.f32 1.442695, %v217_v52  ;;  %v327_v55 = vpop.eup %326 }
 0x121   :  { %v329_v56 = vpop.eup %328  ;;  %174 = vadd.xlane.f32.xlu1 %v327_v55 }
 0x122   :  { %330 = vpow2.f32 %v220_v54  ;;  %198 = vadd.xlane.f32.xlu0 %v329_v56 }
 0x123   :  { %332 = vpow2.f32 %v218_v53 }
 0x128   :  { %v331_v57 = vpop.eup %330 }
 0x129   :  { %v333_v58 = vpop.eup %332  ;;  %224 = vadd.xlane.f32.xlu2 %v331_v57 }
 0x12a   :  { %222 = vadd.xlane.f32.xlu1 %v333_v58 }
 0x18c   :  { %v173_v59 = vpop.xlane.xlu0 %172 }
 0x18d   :  { %v197_v60 = vpop.xlane.xlu2 %196  ;;  %334 = vrcp.f32 %v173_v59 }
 0x18e   :  { %336 = vrcp.f32 %v197_v60 }
 0x193   :  { %v335_v63 = vpop.eup %334 }
 0x194   :  { %v175_v61 = vpop.xlane.xlu1 %174  ;;  %v337_v0 = vpop.eup %336  ;;  %v178_v2 = vmul.f32 %v335_v63, %v173_v59 }
 0x195   :  { %338 = vrcp.f32 %v175_v61  ;;  %v199_v62 = vpop.xlane.xlu0 %198  ;;  %v202_v1 = vmul.f32 %v337_v0, %v197_v60 }
 0x196   :  { %340 = vrcp.f32 %v199_v62  ;;  %v180_v10 = vsub.f32 2.0, %v178_v2 }
 0x197   :  { %v204_v9 = vsub.f32 2.0, %v202_v1 }
 0x198   :  { %v182_v17 = vmul.f32 %v335_v63, %v180_v10 }
 0x199   :  { %v206_v16 = vmul.f32 %v337_v0, %v204_v9 }
 0x19a   :  { %v184_v25 = vmul.f32 %v323_v46, %v182_v17 }
 0x19b   :  { %v339_v3 = vpop.eup %338  ;;  %v208_v24 = vmul.f32 %v325_v48, %v206_v16 }
 0x19c   :  { %v225_v4 = vpop.xlane.xlu2 %224  ;;  %v341_v5 = vpop.eup %340  ;;  %v179_v6 = vmul.f32 %v339_v3, %v175_v61 }
 0x19d   :  { %342 = vrcp.f32 %v225_v4  ;;  %v223_v7 = vpop.xlane.xlu1 %222  ;;  %v203_v8 = vmul.f32 %v341_v5, %v199_v62  ;;  %v210_v31 = vadd.f32 %v208_v24, %v184_v25 }
 0x19e   :  { %344 = vrcp.f32 %v223_v7  ;;  %v181_v11 = vsub.f32 2.0, %v179_v6 }
 0x19f   :  { %v205_v12 = vsub.f32 2.0, %v203_v8 }
 0x1a0   :  { %v183_v13 = vmul.f32 %v339_v3, %v181_v11 }
 0x1a1   :  { %v207_v14 = vmul.f32 %v341_v5, %v205_v12 }
 0x1a2   :  { %v185_v21 = vmul.f32 %v327_v55, %v183_v13 }
 0x1a3   :  { %v343_v15 = vpop.eup %342  ;;  %v209_v22 = vmul.f32 %v329_v56, %v207_v14 }
 0x1a4   :  { %v345_v18 = vpop.eup %344  ;;  %v229_v19 = vmul.f32 %v343_v15, %v225_v4 }
 0x1a5   :  { %v228_v20 = vmul.f32 %v345_v18, %v223_v7  ;;  %v211_v29 = vadd.f32 %v209_v22, %v185_v21 }
 0x1a6   :  { %v231_v23 = vsub.f32 2.0, %v229_v19 }
 0x1a7   :  { %v230_v26 = vsub.f32 2.0, %v228_v20 }
 0x1a8   :  { %v233_v27 = vmul.f32 %v343_v15, %v231_v23 }
 0x1a9   :  { %v232_v28 = vmul.f32 %v345_v18, %v230_v26 }
 0x1aa   :  { %v235_v30 = vmul.f32 %v331_v57, %v233_v27 }
 0x1ab   :  { %v234_v32 = vmul.f32 %v333_v58, %v232_v28 }
 0x1ac   :  { %v237_v33 = vadd.f32 %v235_v30, %v211_v29 }
 0x1ad   :  { %v236_v34 = vadd.f32 %v234_v32, %v210_v31 }
 0x1ae   :  { %v243_v35 = vmax.f32 %v237_v33, 3.526483e-38 }
 0x1af   :  { %v242_v36 = vmax.f32 %v236_v34, 3.526483e-38 }
 0x1b0   :  { %346 = vlog2.f32 %v243_v35 }
 0x1b1   :  { %348 = vlog2.f32 %v242_v36 }
 0x1b6   :  { %v347_v37 = vpop.eup %346 }
 0x1b7   :  { %v349_v38 = vpop.eup %348  ;;  %v247_v39 = vmul.f32 0.6931472, %v347_v37 }
 0x1b8   :  { %v245_v40 = vmul.f32 0.6931472, %v349_v38 }
 0x1b9   :  { %v304_v41 = vadd.f32 -1.0986123, %v247_v39 }
 0x1ba   :  { %v303_v42 = vadd.f32 -1.0986123, %v245_v40 }
 0x1bb   :  { %251 = vst [vmem:[#allocation9 + $0x8] sm:$0xff] %v304_v41 }
 0x1bc   :  { %250 = vst [vmem:[#allocation9] sm:$0xff] %v303_v42 }
 0x1bd   :  { %255 = vsyncadd [#allocation5], 128  ;;  %s258_s30 = sshll.u32 %s497_s3, 4  ;;  %s459_s4 = smov [#allocation9]   ;;  %s259_s30 = int_to_ptr.hbm [resolvable:$true] %s258_s30 }
 0x1be   :  { %s256_s5 = sshll.u32 %s459_s4, 4  ;;  %s460_s6 = smov 128   ;;  %s257_s5 = int_to_ptr.vmem [resolvable:$true] %s256_s5 }
 0x1bf   :  { %s461_s7 = smov 8  }
 0x1c0   :  { %264 = dma.vmem_to_hbm [thread:$0]  %s257_s5, 128, %s259_s30, [#allocation5], %s460_s6, %s460_s6, %s461_s7  }
 0x1c1   :  { %450 = dma.done.wait [#allocation5], 256  }
 0x1c2   :  { %451 = vsyncadd [#allocation5], 4294967040 }
 0x1c3   :  { %269 = vsyncpa [#allocation4], 1 }
 0x1c4   :  { %270 = vsyncpa [#allocation7], 1 }
 0x1c5   :  { %271 = vsyncpa [#allocation5], 1 }

</bundles_post_ra>
